<compile_context>
chip_gen: v7x
topology: tpu7x:2x2x1
jax: 0.10.0
libtpu: 0.0.40
codegen_flags: <defaults>
</compile_context>

<pallas_src>
import jax
import jax.numpy as jnp
from jax.experimental import pallas as pl
from jax.experimental.pallas import tpu as pltpu


def _round_up(x, m):
    return ((x + m - 1) // m) * m


def _ua_linear_kernel(xm_ref, xv_ref, wt_ref, b_ref, ym_ref, yv_ref,
                      ym_acc, yv_acc):
    # xm_ref, xv_ref : [tm, tk]  input mean / variance tiles (VMEM)
    # wt_ref         : [tk, tn]  pre-transposed weight tile (W.T)
    # b_ref          : [1,  tn]  bias tile
    # ym_ref, yv_ref : [tm, tn]  output tiles
    # ym_acc, yv_acc : [tm, tn]  f32 accumulators, resident across K
    k = pl.program_id(2)

    @pl.when(k == 0)
    def _init():
        # Fold the bias into the mean accumulator init (saves an epilogue add).
        ym_acc[...] = jnp.broadcast_to(
            b_ref[...].astype(jnp.float32), ym_acc.shape)
        yv_acc[...] = jnp.zeros_like(yv_acc)

    wt = wt_ref[...]

    # Mean path: MXU matmul with f32 accumulation.
    ym_acc[...] += jnp.dot(xm_ref[...], wt,
                           preferred_element_type=jnp.float32)

    # Variance path: propagate variances through squared weights.
    # Square in f32 (safe if weights are ever bf16), cast back for the MXU.
    wt_f32 = wt.astype(jnp.float32)
    wt_sq = (wt_f32 * wt_f32).astype(wt.dtype)
    yv_acc[...] += jnp.dot(xv_ref[...], wt_sq,
                           preferred_element_type=jnp.float32)

    @pl.when(k == pl.num_programs(2) - 1)
    def _store():
        ym_ref[...] = ym_acc[...].astype(ym_ref.dtype)
        yv_ref[...] = yv_acc[...].astype(yv_ref.dtype)


def ua_linear(x_mean, x_var, weight_t, bias, *, tm=256, tn=512, tk=512):
    """Uncertainty-aware linear layer.

    Args:
      x_mean, x_var: [B, IN] input mean / variance matrices.
      weight_t: [IN, OUT] weight already transposed from the PyTorch
        [OUT, IN] convention (store it this way once; no per-call transpose).
      bias: [OUT].

    Returns:
      (y_mean, y_var), each [B, OUT]:
        y_mean = x_mean @ weight_t + bias
        y_var  = x_var  @ weight_t**2
    """
    B, IN = x_mean.shape
    IN_w, OUT = weight_t.shape
    assert IN == IN_w and bias.shape == (OUT,)

    # Clamp tile sizes to the (8,128)-aligned problem size so tiny problems
    # still get lane-dense (>=128-wide) output tiles without wasting VMEM.
    tm = min(tm, _round_up(B, 8))
    tn = min(tn, _round_up(OUT, 128))
    tk = min(tk, _round_up(IN, 128))

    Bp, OUTp, INp = _round_up(B, tm), _round_up(OUT, tn), _round_up(IN, tk)

    # Zero padding preserves semantics: padded K contributes 0, padded
    # rows/cols are sliced off at the end.
    xm = x_mean if (Bp, INp) == (B, IN) else jnp.pad(
        x_mean, ((0, Bp - B), (0, INp - IN)))
    xv = x_var if (Bp, INp) == (B, IN) else jnp.pad(
        x_var, ((0, Bp - B), (0, INp - IN)))
    wt = weight_t if (INp, OUTp) == (IN, OUT) else jnp.pad(
        weight_t, ((0, INp - IN), (0, OUTp - OUT)))
    b2d = bias.reshape(1, OUT)
    if OUTp != OUT:
        b2d = jnp.pad(b2d, ((0, 0), (0, OUTp - OUT)))

    grid = (Bp // tm, OUTp // tn, INp // tk)   # K innermost (reduction)

    out_shapes = (
        jax.ShapeDtypeStruct((Bp, OUTp), x_mean.dtype),
        jax.ShapeDtypeStruct((Bp, OUTp), x_var.dtype),
    )

    ym_p, yv_p = pl.pallas_call(
        _ua_linear_kernel,
        out_shape=out_shapes,
        grid=grid,
        in_specs=[
            pl.BlockSpec((tm, tk), lambda i, j, k: (i, k)),   # x_mean tile
            pl.BlockSpec((tm, tk), lambda i, j, k: (i, k)),   # x_var tile
            pl.BlockSpec((tk, tn), lambda i, j, k: (k, j)),   # W.T tile
            pl.BlockSpec((1, tn), lambda i, j, k: (0, j)),    # bias tile
        ],
        out_specs=(
            pl.BlockSpec((tm, tn), lambda i, j, k: (i, j)),   # y_mean
            pl.BlockSpec((tm, tn), lambda i, j, k: (i, j)),   # y_var
        ),
        scratch_shapes=[
            pltpu.VMEM((tm, tn), jnp.float32),                # ym accumulator
            pltpu.VMEM((tm, tn), jnp.float32),                # yv accumulator
        ],
        compiler_params=pltpu.CompilerParams(
            dimension_semantics=("parallel", "parallel", "arbitrary"),
            vmem_limit_bytes=48 * 1024 * 1024,
        ),
    )(xm, xv, wt, b2d)

    if (Bp, OUTp) != (B, OUT):
        ym_p = ym_p[:B, :OUT]
        yv_p = yv_p[:B, :OUT]
    return ym_p, yv_p


if __name__ == "__main__":
    def run_case(key, B, IN, OUT, atol, rtol):
        k_xm, k_xv, k_w, k_b = jax.random.split(key, 4)
        x_mean = jax.random.normal(k_xm, (B, IN), dtype=jnp.float32)
        # Variances must be non-negative.
        x_var = jax.random.uniform(k_xv, (B, IN), dtype=jnp.float32)

        # nn.Linear-style init: U(-1/sqrt(in), 1/sqrt(in)), PyTorch layout.
        bound = 1.0 / float(IN) ** 0.5
        weight = jax.random.uniform(k_w, (OUT, IN), dtype=jnp.float32,
                                    minval=-bound, maxval=bound)
        bias = jax.random.uniform(k_b, (OUT,), dtype=jnp.float32,
                                  minval=-bound, maxval=bound)
        # Store the weight pre-transposed once (parameter storage, not the
        # hot path).
        weight_t = jnp.asarray(weight.T)   # [IN, OUT]

        y_mean, y_var = ua_linear(x_mean, x_var, weight_t, bias)
        jax.block_until_ready((y_mean, y_var))

        hp = jax.lax.Precision.HIGHEST
        ref_mean = jnp.dot(x_mean, weight_t, precision=hp) + bias
        ref_var = jnp.dot(x_var, weight_t ** 2, precision=hp)
        assert y_mean.shape == (B, OUT) and y_var.shape == (B, OUT)
        assert jnp.allclose(y_mean, ref_mean, atol=atol, rtol=rtol), "mean mismatch"
        assert jnp.allclose(y_var, ref_var, atol=atol, rtol=rtol), "var mismatch"

    k1, k2 = jax.random.split(jax.random.PRNGKey(0))
    # Small shape from the module's toy forward (padded internally to a
    # lane-dense 128-wide output tile).
    run_case(k1, B=8, IN=32, OUT=16, atol=1e-4, rtol=1e-4)
    # Larger shape exercising the tiled (M, N, K) grid with K accumulation
    # and parallel batch/OUT axes.
    run_case(k2, B=512, IN=1024, OUT=1024, atol=2e-2, rtol=2e-2)

    print("KERNEL_OK")
</pallas_src>

<mosaic_0001>
module attributes {stable_mosaic.version = 11 : i64} {
  func.func @_ua_linear_kernel(%arg0: i32, %arg1: i32, %arg2: i32, %arg3: memref<8x128xf32, #tpu.memory_space<vmem>>, %arg4: memref<8x128xf32, #tpu.memory_space<vmem>>, %arg5: memref<128x128xf32, #tpu.memory_space<vmem>>, %arg6: memref<1x128xf32, #tpu.memory_space<vmem>>, %arg7: memref<8x128xf32, #tpu.memory_space<vmem>>, %arg8: memref<8x128xf32, #tpu.memory_space<vmem>>, %arg9: memref<8x128xf32, #tpu.memory_space<vmem>>, %arg10: memref<8x128xf32, #tpu.memory_space<vmem>>) attributes {dimension_semantics = [#tpu.dimension_semantics<parallel>, #tpu.dimension_semantics<parallel>, #tpu.dimension_semantics<arbitrary>], iteration_bounds = array<i64: 1, 1, 1>, scalar_prefetch = 0 : i64, scratch_operands = 2 : i64, tpu.core_type = #tpu.core_type<tc>, window_params = [{transform_indices = @transform_0, window_bounds = array<i64: 8, 128>}, {transform_indices = @transform_1, window_bounds = array<i64: 8, 128>}, {transform_indices = @transform_2, window_bounds = array<i64: 128, 128>}, {transform_indices = @transform_3, window_bounds = array<i64: 1, 128>}, {transform_indices = @transform_4, window_bounds = array<i64: 8, 128>}, {transform_indices = @transform_5, window_bounds = array<i64: 8, 128>}]} {
    %c0_i32 = arith.constant 0 : i32
    %0 = arith.cmpi eq, %arg2, %c0_i32 : i32
    %1 = arith.extui %0 : i1 to i32
    %c0_i32_0 = arith.constant 0 : i32
    %2 = arith.cmpi ne, %1, %c0_i32_0 : i32
    scf.if %2 {
      %c0_17 = arith.constant 0 : index
      %c0_18 = arith.constant 0 : index
      %18 = vector.load %arg6[%c0_17, %c0_18] : memref<1x128xf32, #tpu.memory_space<vmem>>, vector<1x128xf32>
      %19 = vector.shape_cast %18 : vector<1x128xf32> to vector<1x128xf32>
      %20 = vector.broadcast %19 : vector<1x128xf32> to vector<8x128xf32>
      %c0_19 = arith.constant 0 : index
      %c0_20 = arith.constant 0 : index
      %21 = vector.load %arg9[%c0_19, %c0_20] : memref<8x128xf32, #tpu.memory_space<vmem>>, vector<8x128xf32>
      tpu.vector_store %arg9[%c0_19, %c0_20], %20 {strides = array<i32>} : memref<8x128xf32, #tpu.memory_space<vmem>>, vector<8x128xf32>,
      %cst_21 = arith.constant 0.000000e+00 : f32
      %22 = vector.broadcast %cst_21 : f32 to vector<8x128xf32>
      %c0_22 = arith.constant 0 : index
      %c0_23 = arith.constant 0 : index
      %23 = vector.load %arg10[%c0_22, %c0_23] : memref<8x128xf32, #tpu.memory_space<vmem>>, vector<8x128xf32>
      tpu.vector_store %arg10[%c0_22, %c0_23], %22 {strides = array<i32>} : memref<8x128xf32, #tpu.memory_space<vmem>>, vector<8x128xf32>,
    } else {
    }
    %c0 = arith.constant 0 : index
    %c0_1 = arith.constant 0 : index
    %3 = vector.load %arg5[%c0, %c0_1] : memref<128x128xf32, #tpu.memory_space<vmem>>, vector<128x128xf32>
    %c0_2 = arith.constant 0 : index
    %c0_3 = arith.constant 0 : index
    %4 = vector.load %arg9[%c0_2, %c0_3] : memref<8x128xf32, #tpu.memory_space<vmem>>, vector<8x128xf32>
    %c0_4 = arith.constant 0 : index
    %c0_5 = arith.constant 0 : index
    %5 = vector.load %arg3[%c0_4, %c0_5] : memref<8x128xf32, #tpu.memory_space<vmem>>, vector<8x128xf32>
    %cst = arith.constant dense<0.000000e+00> : vector<8x128xf32>
    %6 = tpu.matmul %5, %3, %cst {dimension_numbers = #tpu.dot_dimension_numbers<[1], [0], [0], [1], [0, 0, 1, 1], [], []>} : vector<8x128xf32>, vector<128x128xf32>, vector<8x128xf32> -> vector<8x128xf32>
    %7 = arith.addf %4, %6 : vector<8x128xf32>
    %c0_6 = arith.constant 0 : index
    %c0_7 = arith.constant 0 : index
    %8 = vector.load %arg9[%c0_6, %c0_7] : memref<8x128xf32, #tpu.memory_space<vmem>>, vector<8x128xf32>
    tpu.vector_store %arg9[%c0_6, %c0_7], %7 {strides = array<i32>} : memref<8x128xf32, #tpu.memory_space<vmem>>, vector<8x128xf32>,
    %9 = arith.mulf %3, %3 : vector<128x128xf32>
    %c0_8 = arith.constant 0 : index
    %c0_9 = arith.constant 0 : index
    %10 = vector.load %arg10[%c0_8, %c0_9] : memref<8x128xf32, #tpu.memory_space<vmem>>, vector<8x128xf32>
    %c0_10 = arith.constant 0 : index
    %c0_11 = arith.constant 0 : index
    %11 = vector.load %arg4[%c0_10, %c0_11] : memref<8x128xf32, #tpu.memory_space<vmem>>, vector<8x128xf32>
    %cst_12 = arith.constant dense<0.000000e+00> : vector<8x128xf32>
    %12 = tpu.matmul %11, %9, %cst_12 {dimension_numbers = #tpu.dot_dimension_numbers<[1], [0], [0], [1], [0, 0, 1, 1], [], []>} : vector<8x128xf32>, vector<128x128xf32>, vector<8x128xf32> -> vector<8x128xf32>
    %13 = arith.addf %10, %12 : vector<8x128xf32>
    %c0_13 = arith.constant 0 : index
    %c0_14 = arith.constant 0 : index
    %14 = vector.load %arg10[%c0_13, %c0_14] : memref<8x128xf32, #tpu.memory_space<vmem>>, vector<8x128xf32>
    tpu.vector_store %arg10[%c0_13, %c0_14], %13 {strides = array<i32>} : memref<8x128xf32, #tpu.memory_space<vmem>>, vector<8x128xf32>,
    %c0_i32_15 = arith.constant 0 : i32
    %15 = arith.cmpi eq, %arg2, %c0_i32_15 : i32
    %16 = arith.extui %15 : i1 to i32
    %c0_i32_16 = arith.constant 0 : i32
    %17 = arith.cmpi ne, %16, %c0_i32_16 : i32
    scf.if %17 {
      %c0_17 = arith.constant 0 : index
      %c0_18 = arith.constant 0 : index
      %18 = vector.load %arg9[%c0_17, %c0_18] : memref<8x128xf32, #tpu.memory_space<vmem>>, vector<8x128xf32>
      %c0_19 = arith.constant 0 : index
      %c0_20 = arith.constant 0 : index
      %19 = vector.load %arg7[%c0_19, %c0_20] : memref<8x128xf32, #tpu.memory_space<vmem>>, vector<8x128xf32>
      tpu.vector_store %arg7[%c0_19, %c0_20], %18 {strides = array<i32>} : memref<8x128xf32, #tpu.memory_space<vmem>>, vector<8x128xf32>,
      %c0_21 = arith.constant 0 : index
      %c0_22 = arith.constant 0 : index
      %20 = vector.load %arg10[%c0_21, %c0_22] : memref<8x128xf32, #tpu.memory_space<vmem>>, vector<8x128xf32>
      %c0_23 = arith.constant 0 : index
      %c0_24 = arith.constant 0 : index
      %21 = vector.load %arg8[%c0_23, %c0_24] : memref<8x128xf32, #tpu.memory_space<vmem>>, vector<8x128xf32>
      tpu.vector_store %arg8[%c0_23, %c0_24], %20 {strides = array<i32>} : memref<8x128xf32, #tpu.memory_space<vmem>>, vector<8x128xf32>,
    } else {
    }
    return
  }
  func.func @transform_0(%arg0: i32, %arg1: i32, %arg2: i32) -> (i32, i32) {
    %c0_i32 = arith.constant 0 : i32
    return %arg0, %arg2 : i32, i32
  }
  func.func @transform_1(%arg0: i32, %arg1: i32, %arg2: i32) -> (i32, i32) {
    %c0_i32 = arith.constant 0 : i32
    return %arg0, %arg2 : i32, i32
  }
  func.func @transform_2(%arg0: i32, %arg1: i32, %arg2: i32) -> (i32, i32) {
    %c0_i32 = arith.constant 0 : i32
    return %arg2, %arg1 : i32, i32
  }
  func.func @transform_3(%arg0: i32, %arg1: i32, %arg2: i32) -> (i32, i32) {
    %c0_i32 = arith.constant 0 : i32
    %c0_i32_0 = arith.constant 0 : i32
    return %c0_i32, %arg1 : i32, i32
  }
  func.func @transform_4(%arg0: i32, %arg1: i32, %arg2: i32) -> (i32, i32) {
    %c0_i32 = arith.constant 0 : i32
    return %arg0, %arg1 : i32, i32
  }
  func.func @transform_5(%arg0: i32, %arg1: i32, %arg2: i32) -> (i32, i32) {
    %c0_i32 = arith.constant 0 : i32
    return %arg0, %arg1 : i32, i32
  }
}

</mosaic_0001>

<bundles_post_ra>
// kernel: tpu_custom_call.1
= control target key start
LH: loop header
LB: loop body
LE: loop exit
PB: predicated region body
PF: predicated region fallthrough
CT: control target
= control target key end

     0   :  { %11 = vsyncpa [#allocation5], 0  ;;  %s695_s0 = inlined_call_operand.hbm [shape: f32[8,128], index: 0, kind: input, shape index: {}]   ;;  %s696_s1 = inlined_call_operand.hbm [shape: f32[8,128], index: 1, kind: input, shape index: {}]   ;;  %s697_s2 = inlined_call_operand.hbm [shape: f32[128,128], index: 2, kind: input, shape index: {}]   ;;  %s698_s3 = inlined_call_operand.vmem [shape: f32[1,128], index: 3, kind: input, shape index: {}]   ;;  %s699_s4 = inlined_call_operand.hbm [shape: f32[8,128], index: 4, kind: output, shape index: {0}]   ;;  %s700_s5 = inlined_call_operand.hbm [shape: f32[8,128], index: 5, kind: output, shape index: {1}]  }
   0x1   :  { %12 = vsyncpa [#allocation8], 0 }
   0x2   :  { %13 = vsyncpa [#allocation6], 0 }
   0x3   :  { %14 = vsyncpa [#allocation12], 0  ;;  %s569_s18 = smov [#allocation7]   ;;  %s570_s20 = smov [#allocation4]  }
   0x4   :  { %s31_s19 = sshll.u32 %s569_s18, 4  ;;  %s21_s21 = sshll.u32 %s570_s20, 4  ;;  %s32_s19 = int_to_ptr.vmem [resolvable:$true] %s31_s19  ;;  %s22_s21 = int_to_ptr.vmem [resolvable:$true] %s21_s21 }
   0x5   :  { %s451_s24 = scalar_lea.hbm %s696_s1, 128 }
   0x6   :  { %p452_p0 = scmp.ne.s32.totalorder %s696_s1, %s451_s24  ;;  %p455_p1 = scmp.lt.u32.totalorder %s451_s24, %s696_s1 }
   0x8   :  { %p457_p2 = pnand %p455_p1, %p452_p0 }
   0xa   :  { %460 = shalt.err (!%p457_p2)
}
   0xb   :  { %s461_s29 = scalar_lea.vmem %s32_s19, 128  ;;  %p466_p4 = scmp.lt.s32.totalorder %s32_s19, %s32_s19 }
   0xc   :  { %p462_p3 = scmp.ne.s32.totalorder %s32_s19, %s461_s29  ;;  %p467_p5 = scmp.lt.s32.totalorder %s461_s29, %s461_s29 }
   0xe   :  { %p468_p6 = por %p467_p5, %p466_p4 }
  0x10   :  { %p469_p7 = pnand %p468_p6, %p462_p3 }
  0x12   :  { %472 = shalt.err (!%p469_p7)
}
  0x13   :  { %34 = dma.hbm_to_vmem [thread:$0]  %s696_s1, 128, %s32_s19, [#allocation8]  }
  0x14   :  { %s473_s9 = scalar_lea.hbm %s695_s0, 128 }
  0x15   :  { %p474_p8 = scmp.ne.s32.totalorder %s695_s0, %s473_s9  ;;  %p477_p9 = scmp.lt.u32.totalorder %s473_s9, %s695_s0 }
  0x17   :  { %p479_p10 = pnand %p477_p9, %p474_p8 }
  0x19   :  { %482 = shalt.err (!%p479_p10)
}
  0x1a   :  { %s483_s14 = scalar_lea.vmem %s22_s21, 128  ;;  %p488_p12 = scmp.lt.s32.totalorder %s22_s21, %s22_s21 }
  0x1b   :  { %p484_p11 = scmp.ne.s32.totalorder %s22_s21, %s483_s14  ;;  %p489_p13 = scmp.lt.s32.totalorder %s483_s14, %s483_s14 }
  0x1d   :  { %p490_p0 = por %p489_p13, %p488_p12 }
  0x1f   :  { %p491_p1 = pnand %p490_p0, %p484_p11 }
  0x21   :  { %494 = shalt.err (!%p491_p1)
}
  0x22   :  { %24 = dma.hbm_to_vmem [thread:$0]  %s695_s0, 128, %s22_s21, [#allocation5]  }
  0x23   :  { %s571_s16 = smov [#allocation9]   ;;  %s495_s20 = scalar_lea.hbm %s697_s2, 2048 }
  0x24   :  { %s40_s17 = sshll.u32 %s571_s16, 4  ;;  %p496_p2 = scmp.ne.s32.totalorder %s697_s2, %s495_s20  ;;  %s41_s17 = int_to_ptr.vmem [resolvable:$true] %s40_s17 }
  0x25   :  { %p499_p3 = scmp.lt.u32.totalorder %s495_s20, %s697_s2 }
  0x27   :  { %p501_p4 = pnand %p499_p3, %p496_p2 }
  0x29   :  { %504 = shalt.err (!%p501_p4)
}
  0x2a   :  { %s505_s26 = scalar_lea.vmem %s41_s17, 2048  ;;  %p510_p6 = scmp.lt.s32.totalorder %s41_s17, %s41_s17 }
  0x2b   :  { %p506_p5 = scmp.ne.s32.totalorder %s41_s17, %s505_s26  ;;  %p511_p7 = scmp.lt.s32.totalorder %s505_s26, %s505_s26 }
  0x2d   :  { %p512_p8 = por %p511_p7, %p510_p6 }
  0x2f   :  { %p513_p9 = pnand %p512_p8, %p506_p5 }
  0x31   :  { %516 = shalt.err (!%p513_p9)
}
  0x32   :  { %s572_s0 = smov 128   ;;  %s573_s21 = smov 8  }
  0x33   :  { %46 = dma.hbm_to_vmem [thread:$0]  %s697_s2, 2048, %s41_s17, [#allocation8], %s572_s0, %s572_s0, %s573_s21  }
  0x34   :  { %561 = dma.done.wait [#allocation5], 128  }
  0x35   :  { %562 = vsyncadd [#allocation5], 4294967168 }
  0x36   :  { %563 = dma.done.wait [#allocation8], 2176  }
  0x37   :  { %564 = vsyncadd [#allocation8], 4294965120  ;;  %v574_v0 = vmov 0.0|0.0   ;;  %vm575_vm0 = vmmov 0   ;;  %v576_v1 = vmov 0.0   ;;  %v71_v2 = vld [vmem:[#allocation9] sm:$0xff] }
  0x38   :  { %393 = vmatprep.subr.bf16.mxu0 %v574_v0  ;;  %417 = vmatprep.subr.bf16.mxu1 %v574_v0  ;;  %v72_v3 = vld [vmem:[#allocation9 + $0x8] sm:$0xff]  ;;  %v73_v4 = vld [vmem:[#allocation9 + $0x10] sm:$0xff]  ;;  %v161_v6 = vmul.f32 %v71_v2, %v71_v2  ;;  %v74_v8 = vld [vmem:[#allocation9 + $0x18] sm:$0xff]  ;;  %s577_s30 = smov [#allocation10]   ;;  %s578_s7 = smov [#allocation11]  }
  0x39   :  { %355 = vmatprep.mubr.msk.f32.mxu0 %vm575_vm0, %v576_v1  ;;  %390 = vmatprep.mubr.msk.f32.mxu1 %vm575_vm0, %v576_v1  ;;  %v394_v5 = vpack.c.bf16 %v72_v3, %v71_v2  ;;  %v162_v7 = vmul.f32 %v72_v3, %v72_v3  ;;  %v163_v9 = vmul.f32 %v73_v4, %v73_v4  ;;  %v75_v11 = vld [vmem:[#allocation9 + $0x20] sm:$0xff]  ;;  %v76_v12 = vld [vmem:[#allocation9 + $0x28] sm:$0xff]  ;;  %v77_v18 = vld [vmem:[#allocation9 + $0x30] sm:$0xff]  ;;  %s264_s6 = sshll.u32 %s577_s30, 4  ;;  %s274_s8 = sshll.u32 %s578_s7, 4  ;;  %s265_s6 = int_to_ptr.vmem [resolvable:$true] %s264_s6  ;;  %s664_s8 = int_to_ptr.vmem [resolvable:$true] %s274_s8 }
  0x3a   :  { %v164_v10 = vmul.f32 %v74_v8, %v74_v8  ;;  %v397_v14 = vpack.c.bf16 %v74_v8, %v73_v4  ;;  %v165_v16 = vmul.f32 %v75_v11, %v75_v11  ;;  %v166_v17 = vmul.f32 %v76_v12, %v76_v12  ;;  %v78_v19 = vld [vmem:[#allocation9 + $0x38] sm:$0xff]  ;;  %v79_v24 = vld [vmem:[#allocation9 + $0x40] sm:$0xff]  ;;  %v80_v25 = vld [vmem:[#allocation9 + $0x48] sm:$0xff]  ;;  %s517_s9 = scalar_lea.vmem %s265_s6, 128  ;;  %p522_p11 = scmp.lt.s32.totalorder %s265_s6, %s265_s6 }
  0x3b   :  { %395 = vmatpush3.bf16.msra.mxu0 %v394_v5  ;;  %v418_v13 = vpack.c.bf16 %v162_v7, %v161_v6  ;;  %v400_v20 = vpack.c.bf16 %v76_v12, %v75_v11  ;;  %v167_v22 = vmul.f32 %v77_v18, %v77_v18  ;;  %v168_v23 = vmul.f32 %v78_v19, %v78_v19  ;;  %v81_v30 = vld [vmem:[#allocation9 + $0x50] sm:$0xff]  ;;  %v82_v31 = vld [vmem:[#allocation9 + $0x58] sm:$0xff]  ;;  %v83_v36 = vld [vmem:[#allocation9 + $0x60] sm:$0xff]  ;;  %p518_p10 = scmp.ne.s32.totalorder %s265_s6, %s517_s9  ;;  %p523_p12 = scmp.lt.s32.totalorder %s517_s9, %s517_s9 }
  0x3c   :  { %396 = vmatprep.subr.bf16.mxu0 %v574_v0  ;;  %v421_v15 = vpack.c.bf16 %v164_v10, %v163_v9  ;;  %v424_v21 = vpack.c.bf16 %v166_v17, %v165_v16  ;;  %v403_v26 = vpack.c.bf16 %v78_v19, %v77_v18  ;;  %v169_v28 = vmul.f32 %v79_v24, %v79_v24  ;;  %v84_v37 = vld [vmem:[#allocation9 + $0x68] sm:$0xff]  ;;  %v85_v42 = vld [vmem:[#allocation9 + $0x70] sm:$0xff]  ;;  %v86_v43 = vld [vmem:[#allocation9 + $0x78] sm:$0xff] }
  0x3d   :  { %419 = vmatpush3.bf16.msra.mxu1 %v418_v13  ;;  %v427_v27 = vpack.c.bf16 %v168_v23, %v167_v22  ;;  %v170_v29 = vmul.f32 %v80_v25, %v80_v25  ;;  %v406_v32 = vpack.c.bf16 %v80_v25, %v79_v24  ;;  %v171_v34 = vmul.f32 %v81_v30, %v81_v30  ;;  %v88_v50 = vld [vmem:[#allocation4] sm:$0xff]  ;;  %v178_v51 = vld [vmem:[#allocation7] sm:$0xff]  ;;  %p524_p13 = por %p523_p12, %p522_p11 }
  0x3e   :  { %420 = vmatprep.subr.bf16.mxu1 %v574_v0  ;;  %v172_v35 = vmul.f32 %v82_v31, %v82_v31  ;;  %v409_v38 = vpack.c.bf16 %v82_v31, %v81_v30  ;;  %v173_v40 = vmul.f32 %v83_v36, %v83_v36  ;;  %v174_v41 = vmul.f32 %v84_v37, %v84_v37  ;;  %v288_v52 = vld [vmem:[%s698_s3] ss:$0 sm:$0xff] }
  0x3f   :  { %398 = vmatpush3.bf16.msra.mxu0 %v397_v14  ;;  %v430_v33 = vpack.c.bf16 %v170_v29, %v169_v28  ;;  %v412_v44 = vpack.c.bf16 %v84_v37, %v83_v36  ;;  %v175_v46 = vmul.f32 %v85_v42, %v85_v42  ;;  %v176_v47 = vmul.f32 %v86_v43, %v86_v43  ;;  %p525_p0 = pnand %p524_p13, %p518_p10 }
  0x40   :  { %399 = vmatprep.subr.bf16.mxu0 %v574_v0  ;;  %v433_v39 = vpack.c.bf16 %v172_v35, %v171_v34  ;;  %v436_v45 = vpack.c.bf16 %v174_v41, %v173_v40  ;;  %v415_v48 = vpack.c.bf16 %v86_v43, %v85_v42 }
  0x41   :  { %422 = vmatpush3.bf16.msra.mxu1 %v421_v15  ;;  %v439_v49 = vpack.c.bf16 %v176_v47, %v175_v46 }
  0x42   :  { %423 = vmatprep.subr.bf16.mxu1 %v574_v0 }
  0x43   :  { %401 = vmatpush3.bf16.msra.mxu0 %v400_v20 }
  0x44   :  { %402 = vmatprep.subr.bf16.mxu0 %v574_v0 }
  0x45   :  { %425 = vmatpush3.bf16.msra.mxu1 %v424_v21 }
  0x46   :  { %426 = vmatprep.subr.bf16.mxu1 %v574_v0 }
  0x47   :  { %404 = vmatpush3.bf16.msra.mxu0 %v403_v26 }
  0x48   :  { %405 = vmatprep.subr.bf16.mxu0 %v574_v0 }
  0x49   :  { %428 = vmatpush3.bf16.msra.mxu1 %v427_v27 }
  0x4a   :  { %429 = vmatprep.subr.bf16.mxu1 %v574_v0 }
  0x4b   :  { %407 = vmatpush3.bf16.msra.mxu0 %v406_v32 }
  0x4c   :  { %408 = vmatprep.subr.bf16.mxu0 %v574_v0 }
  0x4d   :  { %431 = vmatpush3.bf16.msra.mxu1 %v430_v33 }
  0x4e   :  { %432 = vmatprep.subr.bf16.mxu1 %v574_v0 }
  0x4f   :  { %410 = vmatpush3.bf16.msra.mxu0 %v409_v38 }
  0x50   :  { %411 = vmatprep.subr.bf16.mxu0 %v574_v0 }
  0x51   :  { %434 = vmatpush3.bf16.msra.mxu1 %v433_v39 }
  0x52   :  { %435 = vmatprep.subr.bf16.mxu1 %v574_v0 }
  0x53   :  { %413 = vmatpush3.bf16.msra.mxu0 %v412_v44 }
  0x54   :  { %414 = vmatprep.subr.bf16.mxu0 %v574_v0 }
  0x55   :  { %437 = vmatpush3.bf16.msra.mxu1 %v436_v45 }
  0x56   :  { %438 = vmatprep.subr.bf16.mxu1 %v574_v0 }
  0x57   :  { %416 = vmatpush3.bf16.msra.mxu0 %v415_v48 }
  0x59   :  { %440 = vmatpush3.bf16.msra.mxu1 %v439_v49 }
  0x5a   :  { %356 = vmatmul.mubr.f32.vlgmr.msra.gmra.mrb[0].mxu0 %v88_v50 }
  0x5c   :  { %391 = vmatmul.mubr.f32.vlgmr.msra.gmra.mrb[0].mxu1 %v178_v51 }
 0x12d   :  { %v155_v53 = vpop.f32.mrb[0].mxu0 }
 0x12e   :  { %v159_v54 = vadd.f32 %v288_v52, %v155_v53  ;;  %v357_v55 = vpop.f32.mrb[1].mxu0 }
 0x12f   :  { %v245_v56 = vpop.f32.mrb[0].mxu1 }
 0x130   :  { %255 = vst [vmem:[#allocation10] sm:$0xff] %v159_v54  ;;  %257 = vst [vmem:[#allocation11] sm:$0xff] %v245_v56  ;;  %v392_v57 = vpop.f32.mrb[1].mxu1 }
 0x131   :  { %528 = shalt.err (!%p525_p0)
}
 0x132   :  { %s529_s11 = scalar_lea.hbm %s699_s4, 128 }
 0x133   :  { %p530_p1 = scmp.ne.s32.totalorder %s699_s4, %s529_s11  ;;  %p533_p2 = scmp.lt.u32.totalorder %s529_s11, %s699_s4 }
 0x135   :  { %p535_p3 = pnand %p533_p2, %p530_p1 }
 0x137   :  { %538 = shalt.err (!%p535_p3)
}
 0x138   :  { %267 = dma.vmem_to_hbm [thread:$0]  %s265_s6, 128, %s699_s4, [#allocation6]  }
 0x139   :  { %s539_s17 = scalar_lea.vmem %s664_s8, 128  ;;  %p544_p5 = scmp.lt.s32.totalorder %s664_s8, %s664_s8 }
 0x13a   :  { %p540_p4 = scmp.ne.s32.totalorder %s664_s8, %s539_s17  ;;  %p545_p6 = scmp.lt.s32.totalorder %s539_s17, %s539_s17 }
 0x13c   :  { %p546_p7 = por %p545_p6, %p544_p5 }
 0x13e   :  { %p547_p8 = pnand %p546_p7, %p540_p4 }
 0x140   :  { %550 = shalt.err (!%p547_p8)
}
 0x141   :  { %s551_s20 = scalar_lea.hbm %s700_s5, 128 }
 0x142   :  { %p552_p9 = scmp.ne.s32.totalorder %s700_s5, %s551_s20  ;;  %p555_p10 = scmp.lt.u32.totalorder %s551_s20, %s700_s5 }
 0x144   :  { %p557_p11 = pnand %p555_p10, %p552_p9 }
 0x146   :  { %560 = shalt.err (!%p557_p11)
}
 0x147   :  { %277 = dma.vmem_to_hbm [thread:$0]  %s664_s8, 128, %s700_s5, [#allocation12]  }
 0x148   :  { %565 = dma.done.wait [#allocation6], 128  }
 0x149   :  { %566 = vsyncadd [#allocation6], 4294967168 }
 0x14a   :  { %567 = dma.done.wait [#allocation12], 128  }
 0x14b   :  { %568 = vsyncadd [#allocation12], 4294967168 }
 0x14c   :  { %284 = vsyncpa [#allocation5], 1 }
 0x14d   :  { %285 = vsyncpa [#allocation8], 1 }
 0x14e   :  { %286 = vsyncpa [#allocation6], 1 }
 0x14f   :  { %287 = vsyncpa [#allocation12], 1 }

</bundles_post_ra>
